<compile_context>
chip_gen: v7x
topology: tpu7x:2x2x1
jax: 0.10.0
libtpu: 0.0.40
codegen_flags: <defaults>
</compile_context>

<pallas_src>
import functools

import jax
import jax.numpy as jnp
from jax.experimental import pallas as pl
from jax.experimental.pallas import tpu as pltpu


_MIN_TM = 16                      # sublane / bf16-pack friendly minimum M tile
_FALLBACK_VMEM = 64 * 1024 * 1024  # conservative (v7x-sized) if query fails


def _round_up(a: int, b: int) -> int:
    return (a + b - 1) // b * b


def _tpu_vmem_capacity() -> int:
    try:
        return int(pltpu.get_tpu_info().vmem_capacity_bytes)
    except Exception:
        return _FALLBACK_VMEM


def _vmem_bytes(tm, dim, th, act_isz, w_isz, n_steps):
    """Rough per-step VMEM working set (double-buffered BlockSpec pipeline)."""
    b = 2 * tm * dim * act_isz            # x blocks
    b += 2 * dim * (2 * th) * w_isz       # fused gate-weight tile
    b += 2 * th * dim * w_isz             # down-proj weight tile
    b += 2 * tm * dim * act_isz           # output blocks
    if n_steps > 1:
        b += tm * dim * 4                 # f32 accumulator scratch
    b += 3 * tm * (2 * th) * 4            # f32 h / gated / cast temporaries
    return b


def _select_tm(M, dim, th, act_isz, w_isz, n_steps, vmem_cap):
    """Generation-aware M tile from the VMEM capacity + roofline."""
    big_vmem = vmem_cap >= 96 * 1024 * 1024   # v5e / v6e class (128 MiB)
    # v6e needs ~650-700 FLOP/byte to be MXU-bound -> tm~768; v7x only ~310
    # FLOP/byte and has half the VMEM -> tm~384; v5e is fine at either.
    tm = 768 if big_vmem else 384
    tm = min(tm, _round_up(M, _MIN_TM))
    # v7x: keep >= 2 M tiles so the "parallel" axis shards across both TCs.
    if (not big_vmem) and M >= 256 and pl.cdiv(M, tm) < 2:
        tm = _round_up(pl.cdiv(M, 2), _MIN_TM)
    budget = vmem_cap - (8 << 20)             # headroom for internal scratch
    while tm > _MIN_TM and _vmem_bytes(tm, dim, th, act_isz, w_isz,
                                       n_steps) > budget:
        tm = max(_MIN_TM, _round_up(tm // 2, _MIN_TM))
    return tm


def _mlp_kernel(x_ref, w13_ref, w2_ref, o_ref, *scratch, th: int, n_steps: int):
    # x_ref   : (tm, dim)         native dtype
    # w13_ref : (dim, 2*th)       [w1_tile.T | w3_tile.T], canonical (K, N)
    # w2_ref  : (th, dim)         w2[:, tile].T, canonical (K, N)
    # o_ref   : (tm, dim)
    # scratch : ((tm, dim) f32 accumulator,) iff n_steps > 1
    hstep = pl.program_id(1)

    x = x_ref[...]
    # Fused gate projection: x @ [w1_t ; w3_t]^T -> (tm, 2*th), f32 accumulate.
    g = jnp.dot(x, w13_ref[...], preferred_element_type=jnp.float32)
    h1 = g[:, :th]
    h3 = g[:, th:]
    # SwiGLU gate: silu(h1) * h3 with exp + reciprocal both on the EUP slot.
    gated = h1 * pl.reciprocal(1.0 + jnp.exp(-h1), approx=True) * h3

    # Down-projection K-chunk: gated @ w2[:, tile]^T -> (tm, dim), f32.
    contrib = jnp.dot(gated.astype(w2_ref.dtype), w2_ref[...],
                      preferred_element_type=jnp.float32)

    if n_steps == 1:
        o_ref[...] = contrib.astype(o_ref.dtype)
        return

    acc_ref = scratch[0]

    @pl.when(hstep == 0)
    def _():
        acc_ref[...] = contrib                       # no zeros-init + RMW

    @pl.when(jnp.logical_and(hstep > 0, hstep < n_steps - 1))
    def _():
        acc_ref[...] += contrib

    @pl.when(hstep == n_steps - 1)
    def _():
        o_ref[...] = (acc_ref[...] + contrib).astype(o_ref.dtype)


def pick_hidden_tile(hidden: int, max_th: int = 512) -> int:
    """Largest lane-aligned hidden tile <= max_th that divides hidden."""
    if hidden <= max_th:
        return hidden
    t = (max_th // 128) * 128
    while t >= 128:
        if hidden % t == 0:
            return t
        t -= 128
    return hidden


def prepare_weights(w1, w3, w2, th: int):
    """One-time init-side weight prep (PyTorch nn.Linear layouts in).

    w1, w3 : (hidden, dim)   w2 : (dim, hidden)
    Returns
      w13b : (hidden//th, dim, 2*th)  per hidden-tile [w1_t.T | w3_t.T]
      w2b  : (hidden//th, th, dim)    per hidden-tile w2[:, tile].T
    Each grid step reads one contiguous block of each and feeds the MXU in
    canonical (K, N) form.  Do this once per model, not per forward call.
    """
    hidden, dim = w1.shape
    assert w3.shape == (hidden, dim) and w2.shape == (dim, hidden)
    assert hidden % th == 0
    hb = hidden // th
    w1b = jnp.transpose(w1.reshape(hb, th, dim), (0, 2, 1))   # (hb, dim, th)
    w3b = jnp.transpose(w3.reshape(hb, th, dim), (0, 2, 1))   # (hb, dim, th)
    w13b = jnp.concatenate([w1b, w3b], axis=2)                # (hb, dim, 2*th)
    w2b = jnp.transpose(w2, (1, 0)).reshape(hb, th, dim)      # (hb, th, dim)
    return w13b, w2b


def mlp_pallas(x, w13b, w2b, *, tm: int | None = None, weight_buffers: int = 2):
    """SwiGLU MLP forward.

    x    : (..., dim)
    w13b : (hb, dim, 2*th)  from prepare_weights
    w2b  : (hb, th, dim)    from prepare_weights
    weight_buffers: set to 3 on v6e if weight DMA is still exposed (do NOT on
    v7x — no VMEM headroom).
    """
    hb, dim, two_th = w13b.shape
    th = two_th // 2
    assert two_th == 2 * th
    assert w2b.shape == (hb, th, dim)
    assert x.shape[-1] == dim
    hidden = hb * th

    lead = x.shape[:-1]
    xm = x.reshape(-1, dim)
    M = xm.shape[0]

    act_isz = jnp.dtype(x.dtype).itemsize
    w_isz = jnp.dtype(w13b.dtype).itemsize

    vmem_cap = _tpu_vmem_capacity()
    if tm is None:
        tm = _select_tm(M, dim, th, act_isz, w_isz, hb, vmem_cap)
    tm = max(_MIN_TM, _round_up(tm, _MIN_TM))

    grid_m = pl.cdiv(M, tm)            # ragged last M tile handled by masking
    grid = (grid_m, hb)

    need = _vmem_bytes(tm, dim, th, act_isz, w_isz, hb)
    vmem_limit = int(min(max(need + (8 << 20), 32 << 20),
                         vmem_cap - (2 << 20)))

    flops = 6 * M * dim * hidden       # 2*M*dim*(2*hidden) + 2*M*hidden*dim
    bytes_accessed = (
        M * dim * act_isz * 2                                    # x in + out
        + grid_m * (2 * hidden * dim + hidden * dim) * w_isz)    # weights/M-tile

    def w_spec(shape, index_map):
        if weight_buffers and weight_buffers != 2:
            return pl.BlockSpec(shape, index_map,
                                pipeline_mode=pl.Buffered(weight_buffers))
        return pl.BlockSpec(shape, index_map)

    scratch = [pltpu.VMEM((tm, dim), jnp.float32)] if hb > 1 else []

    out = pl.pallas_call(
        functools.partial(_mlp_kernel, th=th, n_steps=hb),
        out_shape=jax.ShapeDtypeStruct((M, dim), x.dtype),
        grid_spec=pltpu.PrefetchScalarGridSpec(
            num_scalar_prefetch=0,
            grid=grid,
            in_specs=[
                pl.BlockSpec((tm, dim), lambda i, h: (i, 0)),       # activations
                w_spec((None, dim, 2 * th), lambda i, h: (h, 0, 0)),  # gate wt tile
                w_spec((None, th, dim), lambda i, h: (h, 0, 0)),      # down wt tile
            ],
            out_specs=pl.BlockSpec((tm, dim), lambda i, h: (i, 0)),
            scratch_shapes=scratch,
        ),
        compiler_params=pltpu.CompilerParams(
            dimension_semantics=("parallel", "arbitrary"),
            vmem_limit_bytes=vmem_limit),
        cost_estimate=pl.CostEstimate(
            flops=int(flops),
            transcendentals=int(2 * M * hidden),
            bytes_accessed=int(bytes_accessed)),
    )(xm, w13b, w2b)

    return out.reshape(*lead, dim)


def _hidden_dim(dim, hidden_dim, multiple_of):
    hidden_dim = int(2 * hidden_dim / 3)
    hidden_dim = multiple_of * ((hidden_dim + multiple_of - 1) // multiple_of)
    return hidden_dim


if __name__ == "__main__":
    # Module config (mirrors MLP.__init__)
    dim = 128
    hidden_dim_arg = 384
    multiple_of = 128
    hidden = _hidden_dim(dim, hidden_dim_arg, multiple_of)  # -> 256

    batch, seq = 2, 8

    key = jax.random.PRNGKey(0)
    kx, k1, k2, k3 = jax.random.split(key, 4)

    x = jax.random.normal(kx, (batch, seq, dim), dtype=jnp.float32)

    # Deterministic Linear-style init: U(-1/sqrt(fan_in), 1/sqrt(fan_in))
    b1 = 1.0 / (dim ** 0.5)
    b2 = 1.0 / (hidden ** 0.5)
    w1 = jax.random.uniform(k1, (hidden, dim), jnp.float32, -b1, b1)
    w3 = jax.random.uniform(k3, (hidden, dim), jnp.float32, -b1, b1)
    w2 = jax.random.uniform(k2, (dim, hidden), jnp.float32, -b2, b2)

    # Pure-JAX reference (f32)
    h1_ref = x @ w1.T
    ref = (h1_ref * jax.nn.sigmoid(h1_ref) * (x @ w3.T)) @ w2.T

    # (a) multi-step hidden reduction (th=128 -> 2 hidden tiles, acc path)
    w13b_a, w2b_a = prepare_weights(w1, w3, w2, th=128)
    out_a = jax.block_until_ready(mlp_pallas(x, w13b_a, w2b_a))
    assert out_a.shape == ref.shape == (batch, seq, dim)
    assert jnp.allclose(out_a, ref, atol=2e-3, rtol=2e-3)

    # (b) auto hidden tile (single hidden step, no scratch accumulator)
    th_auto = pick_hidden_tile(hidden)
    w13b, w2b = prepare_weights(w1, w3, w2, th=th_auto)
    out_b = jax.block_until_ready(mlp_pallas(x, w13b, w2b))
    assert jnp.allclose(out_b, ref, atol=2e-3, rtol=2e-3)

    # (c) ragged M (M=21 not a multiple of the tile) -> masked partial block,
    #     no wrapper-side padding copy.
    xr = jax.random.normal(jax.random.PRNGKey(7), (3, 7, dim), dtype=jnp.float32)
    h1_r = xr @ w1.T
    ref_r = (h1_r * jax.nn.sigmoid(h1_r) * (xr @ w3.T)) @ w2.T
    out_r = jax.block_until_ready(mlp_pallas(xr, w13b_a, w2b_a))
    assert jnp.allclose(out_r, ref_r, atol=2e-3, rtol=2e-3)

    # (d) bf16 fast path: bf16 operands in, f32 accumulate on the MXU.
    xb = x.astype(jnp.bfloat16)
    out_c = jax.block_until_ready(
        mlp_pallas(xb, w13b.astype(jnp.bfloat16), w2b.astype(jnp.bfloat16)))
    assert jnp.allclose(out_c.astype(jnp.float32), ref, atol=5e-2, rtol=5e-2)

    print("KERNEL_OK")
</pallas_src>

<mosaic_0001>
module attributes {stable_mosaic.version = 11 : i64} {
  func.func @_mlp_kernel(%arg0: i32, %arg1: i32, %arg2: memref<16x128xf32, #tpu.memory_space<vmem>>, %arg3: memref<1x128x256xf32, #tpu.memory_space<vmem>>, %arg4: memref<1x128x128xf32, #tpu.memory_space<vmem>>, %arg5: memref<16x128xf32, #tpu.memory_space<vmem>>, %arg6: memref<16x128xf32, #tpu.memory_space<vmem>>) attributes {dimension_semantics = [#tpu.dimension_semantics<parallel>, #tpu.dimension_semantics<arbitrary>], iteration_bounds = array<i64: 1, 2>, scalar_prefetch = 0 : i64, scratch_operands = 1 : i64, tpu.core_type = #tpu.core_type<tc>, window_params = [{transform_indices = @transform_0, window_bounds = array<i64: 16, 128>}, {transform_indices = @transform_1, window_bounds = array<i64: 1, 128, 256>}, {transform_indices = @transform_2, window_bounds = array<i64: 1, 128, 128>}, {transform_indices = @transform_3, window_bounds = array<i64: 16, 128>}]} {
    %c0 = arith.constant 0 : index
    %c0_0 = arith.constant 0 : index
    %0 = vector.load %arg2[%c0, %c0_0] : memref<16x128xf32, #tpu.memory_space<vmem>>, vector<16x128xf32>
    %c0_1 = arith.constant 0 : index
    %c0_2 = arith.constant 0 : index
    %c0_3 = arith.constant 0 : index
    %1 = vector.load %arg3[%c0_1, %c0_2, %c0_3] : memref<1x128x256xf32, #tpu.memory_space<vmem>>, vector<1x128x256xf32>
    %2 = vector.shape_cast %1 : vector<1x128x256xf32> to vector<128x256xf32>
    %cst = arith.constant dense<0.000000e+00> : vector<16x256xf32>
    %3 = tpu.matmul %0, %2, %cst {dimension_numbers = #tpu.dot_dimension_numbers<[1], [0], [0], [1], [0, 0, 1, 1], [], []>} : vector<16x128xf32>, vector<128x256xf32>, vector<16x256xf32> -> vector<16x256xf32>
    %4 = vector.extract_strided_slice %3 {offsets = [0, 0], sizes = [16, 128], strides = [1, 1]} : vector<16x256xf32> to vector<16x128xf32>
    %5 = vector.extract_strided_slice %3 {offsets = [0, 128], sizes = [16, 128], strides = [1, 1]} : vector<16x256xf32> to vector<16x128xf32>
    %cst_4 = arith.constant 0.000000e+00 : f32
    %6 = vector.broadcast %cst_4 : f32 to vector<16x128xf32>
    %7 = arith.subf %6, %4 : vector<16x128xf32>
    %8 = math.exp %7 : vector<16x128xf32>
    %cst_5 = arith.constant 1.000000e+00 : f32
    %9 = vector.broadcast %cst_5 : f32 to vector<16x128xf32>
    %10 = arith.addf %9, %8 : vector<16x128xf32>
    %11 = tpu.reciprocal %10 {approx = true} : vector<16x128xf32> -> vector<16x128xf32>
    %12 = arith.mulf %4, %11 : vector<16x128xf32>
    %13 = arith.mulf %12, %5 : vector<16x128xf32>
    %c0_6 = arith.constant 0 : index
    %c0_7 = arith.constant 0 : index
    %c0_8 = arith.constant 0 : index
    %14 = vector.load %arg4[%c0_6, %c0_7, %c0_8] : memref<1x128x128xf32, #tpu.memory_space<vmem>>, vector<1x128x128xf32>
    %15 = vector.shape_cast %14 : vector<1x128x128xf32> to vector<128x128xf32>
    %cst_9 = arith.constant dense<0.000000e+00> : vector<16x128xf32>
    %16 = tpu.matmul %13, %15, %cst_9 {dimension_numbers = #tpu.dot_dimension_numbers<[1], [0], [0], [1], [0, 0, 1, 1], [], []>} : vector<16x128xf32>, vector<128x128xf32>, vector<16x128xf32> -> vector<16x128xf32>
    %c0_i32 = arith.constant 0 : i32
    %17 = arith.cmpi eq, %arg1, %c0_i32 : i32
    %18 = arith.extui %17 : i1 to i32
    %c0_i32_10 = arith.constant 0 : i32
    %19 = arith.cmpi ne, %18, %c0_i32_10 : i32
    scf.if %19 {
      %c0_15 = arith.constant 0 : index
      %c0_16 = arith.constant 0 : index
      %28 = vector.load %arg6[%c0_15, %c0_16] : memref<16x128xf32, #tpu.memory_space<vmem>>, vector<16x128xf32>
      tpu.vector_store %arg6[%c0_15, %c0_16], %16 {strides = array<i32>} : memref<16x128xf32, #tpu.memory_space<vmem>>, vector<16x128xf32>,
    } else {
    }
    %c0_i32_11 = arith.constant 0 : i32
    %20 = arith.cmpi sgt, %arg1, %c0_i32_11 : i32
    %c1_i32 = arith.constant 1 : i32
    %21 = arith.cmpi slt, %arg1, %c1_i32 : i32
    %22 = arith.andi %20, %21 : i1
    %23 = arith.extui %22 : i1 to i32
    %c0_i32_12 = arith.constant 0 : i32
    %24 = arith.cmpi ne, %23, %c0_i32_12 : i32
    scf.if %24 {
      %c0_15 = arith.constant 0 : index
      %c0_16 = arith.constant 0 : index
      %28 = vector.load %arg6[%c0_15, %c0_16] : memref<16x128xf32, #tpu.memory_space<vmem>>, vector<16x128xf32>
      %29 = arith.addf %28, %16 : vector<16x128xf32>
      %c0_17 = arith.constant 0 : index
      %c0_18 = arith.constant 0 : index
      %30 = vector.load %arg6[%c0_17, %c0_18] : memref<16x128xf32, #tpu.memory_space<vmem>>, vector<16x128xf32>
      tpu.vector_store %arg6[%c0_17, %c0_18], %29 {strides = array<i32>} : memref<16x128xf32, #tpu.memory_space<vmem>>, vector<16x128xf32>,
    } else {
    }
    %c1_i32_13 = arith.constant 1 : i32
    %25 = arith.cmpi eq, %arg1, %c1_i32_13 : i32
    %26 = arith.extui %25 : i1 to i32
    %c0_i32_14 = arith.constant 0 : i32
    %27 = arith.cmpi ne, %26, %c0_i32_14 : i32
    scf.if %27 {
      %c0_15 = arith.constant 0 : index
      %c0_16 = arith.constant 0 : index
      %28 = vector.load %arg6[%c0_15, %c0_16] : memref<16x128xf32, #tpu.memory_space<vmem>>, vector<16x128xf32>
      %29 = arith.addf %28, %16 : vector<16x128xf32>
      %c0_17 = arith.constant 0 : index
      %c0_18 = arith.constant 0 : index
      %30 = vector.load %arg5[%c0_17, %c0_18] : memref<16x128xf32, #tpu.memory_space<vmem>>, vector<16x128xf32>
      tpu.vector_store %arg5[%c0_17, %c0_18], %29 {strides = array<i32>} : memref<16x128xf32, #tpu.memory_space<vmem>>, vector<16x128xf32>,
    } else {
    }
    return
  }
  func.func @transform_0(%arg0: i32, %arg1: i32) -> (i32, i32) {
    %c0_i32 = arith.constant 0 : i32
    %c0_i32_0 = arith.constant 0 : i32
    return %arg0, %c0_i32 : i32, i32
  }
  func.func @transform_1(%arg0: i32, %arg1: i32) -> (i32, i32, i32) {
    %c0_i32 = arith.constant 0 : i32
    %c0_i32_0 = arith.constant 0 : i32
    %c0_i32_1 = arith.constant 0 : i32
    return %arg1, %c0_i32, %c0_i32_0 : i32, i32, i32
  }
  func.func @transform_2(%arg0: i32, %arg1: i32) -> (i32, i32, i32) {
    %c0_i32 = arith.constant 0 : i32
    %c0_i32_0 = arith.constant 0 : i32
    %c0_i32_1 = arith.constant 0 : i32
    return %arg1, %c0_i32, %c0_i32_0 : i32, i32, i32
  }
  func.func @transform_3(%arg0: i32, %arg1: i32) -> (i32, i32) {
    %c0_i32 = arith.constant 0 : i32
    %c0_i32_0 = arith.constant 0 : i32
    return %arg0, %c0_i32 : i32, i32
  }
}

</mosaic_0001>

<bundles_post_ra>
// kernel: tpu_custom_call.1
= control target key start
LH: loop header
LB: loop body
LE: loop exit
PB: predicated region body
PF: predicated region fallthrough
CT: control target
= control target key end

     0   :  { %8 = vsyncpa [#allocation4], 0  ;;  %s1328_s0 = inlined_call_operand.hbm [shape: f32[16,128], index: 0, kind: input, shape index: {}]   ;;  %s1329_s1 = inlined_call_operand.hbm [shape: f32[2,128,256], index: 1, kind: input, shape index: {}]   ;;  %s1330_s2 = inlined_call_operand.hbm [shape: f32[2,128,128], index: 2, kind: input, shape index: {}]   ;;  %s1331_s3 = inlined_call_operand.hbm [shape: f32[16,128], index: 3, kind: output, shape index: {}]  }
   0x1   :  { %9 = vsyncpa [#allocation7], 0 }
   0x2   :  { %11 = vsyncpa [#allocation7 + $0x1], 0 }
   0x3   :  { %12 = vsyncpa [#allocation5], 0  ;;  %s1044_s12 = smov 0   ;;  %s1046_s13 = smov 0  }
   0x4   :  { %s1048_s14 = smov 0   ;;  %s1050_s15 = smov 0  }
   0x5   :  { %s1052_s16 = smov 0   ;;  %s1054_s17 = smov 0  }
   0x6 LB: > { %s27_s18 = sadd.s32 1, %s1007_s16  ;;  %s63_s19 = sadd.s32 1, %s999_s14  ;;  %s1011_s17 = sphi %s1054_s17, %s18_s17   ;;  %s1007_s16 = sphi %s1052_s16, %s1347_s16   ;;  %s1003_s15 = sphi %s1050_s15, %s1346_s15   ;;  %s999_s14 = sphi %s1048_s14, %s1345_s14   ;;  %s995_s13 = sphi %s1046_s13, %s1344_s13   ;;  %s991_s12 = sphi %s1044_s12, %s1343_s12  }
   0x7   : > { %p28_p0 = scmp.ge.s32.totalorder %s27_s18, 2  ;;  %p70_p1 = scmp.ne.s32.totalorder %s999_s14, %s995_s13 }
   0x8   : > { %p71_p2 = scmp.eq.s32.totalorder %s1011_s17, 0  ;;  %p770_p4 = scmp.lt.s32.totalorder %s1011_s17, 2 }
   0x9   : > { %s1349_s18 = smov (%p28_p0, %s27_s18), 0  ;;  %s168_s21 = sand.u32 1, %s1011_s17  }
   0xa   : > { %p72_p3 = por %p71_p2, %p70_p1  ;;  %s60_s20 = ssub.s32 %s1007_s16, %s1349_s18 }
   0xb   : > { %p61_p5 = scmp.eq.s32.totalorder %s60_s20, 0  ;;  %s170_s22 = sand.u32 1, %s999_s14  }
   0xc   : > { %s627_s23 = sshll.u32 %s1007_s16, 12  ;;  %s611_s25 = sshll.u32 %s170_s22, 8 }
   0xd   : > { %s1088_s24 = scalar_select %p61_p5, %s999_s14, %s63_s19  }
   0xe   : > { %s1093_s28 = scalar_lea.hbm %s1329_s1, %s627_s23  ;;  %p1095_p6 = pnand %p770_p4, %p72_p3 }
   0xf   : > { %s172_s30 = scalar_lea.vmem [#allocation6], %s611_s25  ;;  %s1101_s5 = sshll.u32 %s170_s22, 7 }
  0x10   : > { %s179_s4 = sshll.u32 %s172_s30, 4  ;;  %s1103_s6 = scalar_lea.sflag [#allocation7], %s168_s21  ;;  %s1099_s4 = int_to_ptr.vmem [resolvable:$true] %s179_s4 }
  0x11   : > { %s839_s7 = scalar_lea.hbm %s1093_s28, 4096  ;;  %p841_p8 = pneg %p1095_p6 }
  0x12   : > { %p840_p7 = scmp.ne.s32.totalorder %s1093_s28, %s839_s7  ;;  %s844_s10 = scalar_lea.hbm %s1329_s1, 8192 }
  0x13   : > { %p845_p11 = scmp.lt.u32.totalorder %s1093_s28, %s1329_s1  ;;  %p846_p12 = scmp.lt.u32.totalorder %s844_s10, %s839_s7 }
  0x14   : > { %p842_p9 = pnand %p841_p8, %p840_p7  ;;  %p848_p0 = scmp.lt.u32.totalorder %s839_s7, %s1093_s28 }
  0x15   : > { %p847_p13 = por %p846_p12, %p845_p11 }
  0x16   : > { %p843_p10 = pneg %p842_p9 }
  0x17   : > { %p849_p1 = por %p848_p0, %p847_p13 }
  0x19   : > { %p850_p2 = pnand %p849_p1, %p843_p10 }
  0x1b   : > { %853 = shalt.err (!%p850_p2)
}
  0x1c   : > { %s854_s20 = scalar_lea.vmem %s1099_s4, 4096  ;;  %s1013_s21 = smov [#allocation6]  }
  0x1d   : > { %p855_p3 = scmp.ne.s32.totalorder %s1099_s4, %s854_s20  ;;  %s859_s22 = sshll.u32 %s1013_s21, 4  ;;  %s860_s22 = int_to_ptr.vmem [resolvable:$false] %s859_s22 }
  0x1e   : > { %s861_s23 = scalar_lea.vmem %s860_s22, 8192  ;;  %p862_p7 = scmp.lt.s32.totalorder %s1099_s4, %s860_s22 }
  0x1f   : > { %p857_p4 = pnand %p855_p3, %p841_p8  ;;  %p863_p9 = scmp.lt.s32.totalorder %s861_s23, %s854_s20 }
  0x21   : > { %p858_p5 = pneg %p857_p4  ;;  %p864_p11 = por %p863_p9, %p862_p7 }
  0x23   : > { %p865_p12 = pnand %p864_p11, %p858_p5 }
  0x25   : > { %868 = shalt.err (!%p865_p12)
}
  0x26   : > { %s1014_s25 = smov 256   ;;  %s1015_s26 = smov 16  }
  0x27   : > { %765 = dma.hbm_to_vmem [thread:$0]  (!%p1095_p6), %s1093_s28, 4096, %s1099_s4, %s1103_s6, %s1014_s25, %s1014_s25, %s1015_s26  }
  0x28   : > { %s193_s27 = scalar_lea.vmem [#allocation8], %s1101_s5  ;;  %s1133_s7 = sadd.s32 4294967295, %s1011_s17  }
  0x29   : > { %s200_s30 = sshll.u32 %s193_s27, 4  ;;  %p76_p10 = scmp.ne.s32.totalorder %s995_s13, %s991_s12  ;;  %s1155_s30 = int_to_ptr.vmem [resolvable:$true] %s200_s30 }
  0x2a   : > { %p1332_p13 = scmp.eq.s32.totalorder %s1133_s7, 0  ;;  %p608_p0 = scmp.ge.s32.totalorder %s1011_s17, 1 }
  0x2b   : > { %p139_p1 = scmp.lt.s32.totalorder %s1011_s17, 3  ;;  %s1016_s28 = smov [#allocation3]  }
  0x2c   : > { %p1142_p2 = por %p1332_p13, %p76_p10  ;;  %s154_s4 = sshll.u32 %s1016_s28, 4  ;;  %s1150_s4 = int_to_ptr.vmem [resolvable:$true] %s154_s4 }
  0x2d   : > { %p1146_p3 = pnand %p608_p0, %p139_p1  ;;  %s628_s12 = sshll.u32 %s1007_s16, 11 }
  0x2e   : > { %s1336_s8 = scalar_select %p1142_p2, 1, 0 }
  0x2f   : > { %s1337_s9 = scalar_select %p1146_p3, 1, 0 }
  0x30   : > { %p758_p4 = pneg %p1146_p3  ;;  %s1166_s19 = scalar_lea.hbm %s1330_s2, %s628_s12 }
  0x31   : > { %s869_s20 = scalar_lea.hbm %s1166_s19, 2048  ;;  %s874_s23 = scalar_lea.hbm %s1330_s2, 4096 }
  0x32   : > { %p1159_p5 = pnand %p758_p4, %p1332_p13  ;;  %p870_p7 = scmp.ne.s32.totalorder %s1166_s19, %s869_s20 }
  0x33   : > { %p875_p12 = scmp.lt.u32.totalorder %s1166_s19, %s1330_s2  ;;  %p876_p10 = scmp.lt.u32.totalorder %s874_s23, %s869_s20 }
  0x34   : > { %p872_p9 = pnand %p870_p7, %p841_p8  ;;  %p878_p1 = scmp.lt.u32.totalorder %s869_s20, %s1166_s19 }
  0x35   : > { %p877_p0 = por %p876_p10, %p875_p12 }
  0x36   : > { %p873_p11 = pneg %p872_p9 }
  0x37   : > { %p879_p4 = por %p878_p1, %p877_p0 }
  0x39   : > { %p880_p13 = pnand %p879_p4, %p873_p11 }
  0x3b   : > { %883 = shalt.err (!%p880_p13)
}
  0x3c   : > { %s884_s27 = scalar_lea.vmem %s1155_s30, 2048  ;;  %s1017_s28 = smov [#allocation8]  }
  0x3d   : > { %p885_p7 = scmp.ne.s32.totalorder %s1155_s30, %s884_s27  ;;  %s889_s12 = sshll.u32 %s1017_s28, 4  ;;  %s890_s12 = int_to_ptr.vmem [resolvable:$false] %s889_s12 }
  0x3e   : > { %s891_s10 = scalar_lea.vmem %s890_s12, 4096  ;;  %p892_p3 = scmp.lt.s32.totalorder %s1155_s30, %s890_s12 }
  0x3f   : > { %p887_p9 = pnand %p885_p7, %p841_p8  ;;  %p893_p12 = scmp.lt.s32.totalorder %s891_s10, %s884_s27 }
  0x41   : > { %p888_p2 = pneg %p887_p9  ;;  %p894_p10 = por %p893_p12, %p892_p3 }
  0x43   : > { %p895_p0 = pnand %p894_p10, %p888_p2 }
  0x45   : > { %898 = shalt.err (!%p895_p0)
}
  0x46   : > { %s1018_s11 = smov 128   ;;  %s1019_s20 = smov 8  }
  0x47   : > { %768 = dma.hbm_to_vmem [thread:$0]  (!%p1095_p6), %s1166_s19, 2048, %s1155_s30, %s1103_s6, %s1018_s11, %s1018_s11, %s1019_s20  }
  0x48   : > { %s899_s23 = scalar_lea.hbm %s1328_s0, 256  ;;  %p901_p13 = pneg %p1159_p5 }
  0x49   : > { %p900_p8 = scmp.ne.s32.totalorder %s1328_s0, %s899_s23  ;;  %p906_p11 = scmp.lt.u32.totalorder %s899_s23, %s1328_s0 }
  0x4b   : > { %p902_p2 = pnand %p901_p13, %p900_p8 }
  0x4d   : > { %p903_p3 = pneg %p902_p2 }
  0x4f   : > { %p908_p1 = pnand %p906_p11, %p903_p3 }
  0x51   : > { %911 = shalt.err (!%p908_p1)
}
  0x52   : > { %s912_s29 = scalar_lea.vmem %s1150_s4, 256  ;;  %p920_p9 = scmp.lt.s32.totalorder %s1150_s4, %s1150_s4 }
  0x53   : > { %p913_p6 = scmp.ne.s32.totalorder %s1150_s4, %s912_s29  ;;  %p921_p12 = scmp.lt.s32.totalorder %s912_s29, %s912_s29 }
  0x55   : > { %p915_p4 = pnand %p913_p6, %p901_p13  ;;  %p922_p10 = por %p921_p12, %p920_p9 }
  0x57   : > { %p916_p7 = pneg %p915_p4 }
  0x59   : > { %p923_p0 = pnand %p922_p10, %p916_p7 }
  0x5b   : > { %926 = shalt.err (!%p923_p0)
}
  0x5c   : > { %761 = dma.hbm_to_vmem [thread:$0]  (!%p1159_p5), %s1328_s0, 256, %s1150_s4, [#allocation4], %s1018_s11, %s1018_s11, %s1019_s20  }
  0x5d   : > { %p1339_p8 = scmp.ne.s32.totalorder %s1337_s9, 0 }
  0x5e   : > { %p1340_p2 = scmp.eq.s32.totalorder (!%p1339_p8), %s1133_s7, 0 }
  0x5f   : > { %212 = sbr.rel (%p1339_p8) target bundleno = 651 (0x28b), region = 32 }
  0x66   : > { %978 = dma.done.wait (%p1340_p2), [#allocation4], 256   ;;  %p1341_p13 = pmov %p1340_p2 }
  0x67   : > { %s218_s19 = sand.u32 1, %s1133_s7   ;;  %s220_s5 = sand.u32 1, %s995_s13  }
  0x68   : > { %980 = vsyncadd (%p1341_p13), [#allocation4], 4294967040  ;;  %s619_s12 = sshll.u32 %s220_s5, 8  ;;  %s219_s10 = scalar_lea.sflag [#allocation7], %s218_s19 }
  0x69   : > { %s1223_s21 = scalar_lea.vmem [#allocation6], %s619_s12  ;;  %p1342_p5 = scmp.ne.s32.totalorder %s1336_s8, 0 }
  0x6b   : > { %982 = dma.done.wait (%p1342_p5), %s219_s10, 6144  }
  0x6c   : > { %984 = vsyncadd (%p1342_p5), %s219_s10, 4294961152  ;;  %v1020_v0 = vmov 0.0   ;;  %v259_v1 = vld [vmem:[%s1223_s21 + $0x8] sm:$0xff]  ;;  %v261_v2 = vld [vmem:[%s1223_s21 + $0x18] sm:$0xff]  ;;  %s620_s8 = sshll.u32 %s220_s5, 7  ;;  %p621_p3 = scmp.ne.s32.totalorder %s1003_s15, 0 }
  0x6d   : > { %354 = vmatprep.mubr.f32.mxu0 %v1020_v0  ;;  %v258_v3 = vld [vmem:[%s1223_s21] sm:$0xff]  ;;  %v682_v4 = vpack.c.bf16 %v261_v2, %v259_v1  ;;  %v260_v5 = vld [vmem:[%s1223_s21 + $0x10] sm:$0xff]  ;;  %v263_v6 = vld [vmem:[%s1223_s21 + $0x28] sm:$0xff]  ;;  %s1265_s9 = scalar_lea.vmem [#allocation8], %s620_s8 }
  0x6e   : > { %v265_v7 = vld [vmem:[%s1223_s21 + $0x38] sm:$0xff]  ;;  %v684_v8 = vpack.c.bf16 %v260_v5, %v258_v3  ;;  %v262_v10 = vld [vmem:[%s1223_s21 + $0x20] sm:$0xff]  ;;  %v264_v11 = vld [vmem:[%s1223_s21 + $0x30] sm:$0xff] }
  0x6f   : > { %v686_v9 = vpack.c.bf16 %v265_v7, %v263_v6  ;;  %v267_v12 = vld [vmem:[%s1223_s21 + $0x48] sm:$0xff]  ;;  %683 = vmatprep.subr.bf16.mxu0 %v682_v4  ;;  %v269_v13 = vld [vmem:[%s1223_s21 + $0x58] sm:$0xff]  ;;  %v688_v14 = vpack.c.bf16 %v264_v11, %v262_v10  ;;  %v266_v16 = vld [vmem:[%s1223_s21 + $0x40] sm:$0xff] }
  0x70   : > { %685 = vmatpush1.bf16.msra.mxu0 %v684_v8  ;;  %v690_v15 = vpack.c.bf16 %v269_v13, %v267_v12  ;;  %v268_v17 = vld [vmem:[%s1223_s21 + $0x50] sm:$0xff]  ;;  %v271_v18 = vld [vmem:[%s1223_s21 + $0x68] sm:$0xff]  ;;  %v273_v19 = vld [vmem:[%s1223_s21 + $0x78] sm:$0xff] }
  0x71   : > { %687 = vmatprep.subr.bf16.mxu0 %v686_v9  ;;  %v692_v20 = vpack.c.bf16 %v268_v17, %v266_v16  ;;  %v694_v21 = vpack.c.bf16 %v273_v19, %v271_v18  ;;  %v270_v22 = vld [vmem:[%s1223_s21 + $0x60] sm:$0xff]  ;;  %v272_v23 = vld [vmem:[%s1223_s21 + $0x70] sm:$0xff]  ;;  %v275_v24 = vld [vmem:[%s1223_s21 + $0x88] sm:$0xff] }
  0x72   : > { %v277_v25 = vld [vmem:[%s1223_s21 + $0x98] sm:$0xff]  ;;  %v696_v26 = vpack.c.bf16 %v272_v23, %v270_v22  ;;  %v274_v28 = vld [vmem:[%s1223_s21 + $0x80] sm:$0xff]  ;;  %v276_v29 = vld [vmem:[%s1223_s21 + $0x90] sm:$0xff] }
  0x73   : > { %v698_v27 = vpack.c.bf16 %v277_v25, %v275_v24  ;;  %v279_v30 = vld [vmem:[%s1223_s21 + $0xa8] sm:$0xff]  ;;  %v281_v31 = vld [vmem:[%s1223_s21 + $0xb8] sm:$0xff]  ;;  %v700_v32 = vpack.c.bf16 %v276_v29, %v274_v28  ;;  %v278_v34 = vld [vmem:[%s1223_s21 + $0xa0] sm:$0xff] }
  0x74   : > { %689 = vmatpush1.bf16.msra.mxu0 %v688_v14  ;;  %v702_v33 = vpack.c.bf16 %v281_v31, %v279_v30  ;;  %v280_v35 = vld [vmem:[%s1223_s21 + $0xb0] sm:$0xff]  ;;  %v283_v36 = vld [vmem:[%s1223_s21 + $0xc8] sm:$0xff]  ;;  %v285_v37 = vld [vmem:[%s1223_s21 + $0xd8] sm:$0xff] }
  0x75   : > { %691 = vmatprep.subr.bf16.mxu0 %v690_v15  ;;  %v704_v38 = vpack.c.bf16 %v280_v35, %v278_v34  ;;  %v706_v39 = vpack.c.bf16 %v285_v37, %v283_v36  ;;  %v282_v40 = vld [vmem:[%s1223_s21 + $0xc0] sm:$0xff]  ;;  %v284_v41 = vld [vmem:[%s1223_s21 + $0xd0] sm:$0xff]  ;;  %v287_v42 = vld [vmem:[%s1223_s21 + $0xe8] sm:$0xff] }
  0x76   : > { %v289_v43 = vld [vmem:[%s1223_s21 + $0xf8] sm:$0xff]  ;;  %v708_v44 = vpack.c.bf16 %v284_v41, %v282_v40  ;;  %v286_v46 = vld [vmem:[%s1223_s21 + $0xe0] sm:$0xff]  ;;  %v288_v47 = vld [vmem:[%s1223_s21 + $0xf0] sm:$0xff] }
  0x77   : > { %v710_v45 = vpack.c.bf16 %v289_v43, %v287_v42  ;;  %v712_v48 = vpack.c.bf16 %v288_v47, %v286_v46  ;;  %v256_v49 = vld [vmem:[#allocation3] sm:$0xff]  ;;  %v257_v50 = vld [vmem:[#allocation3 + $0x8] sm:$0xff]  ;;  %v381_v51 = vld [vmem:[%s1265_s9] sm:$0xff] }
  0x78   : > { %693 = vmatpush1.bf16.msra.mxu0 %v692_v20  ;;  %v382_v52 = vld [vmem:[%s1265_s9 + $0x8] sm:$0xff]  ;;  %v383_v54 = vld [vmem:[%s1265_s9 + $0x10] sm:$0xff]  ;;  %v384_v55 = vld [vmem:[%s1265_s9 + $0x18] sm:$0xff] }
  0x79   : > { %695 = vmatprep.subr.bf16.mxu0 %v694_v21  ;;  %v714_v53 = vpack.c.bf16 %v382_v52, %v381_v51  ;;  %v718_v56 = vpack.c.bf16 %v384_v55, %v383_v54  ;;  %v385_v57 = vld [vmem:[%s1265_s9 + $0x20] sm:$0xff]  ;;  %v386_v58 = vld [vmem:[%s1265_s9 + $0x28] sm:$0xff]  ;;  %v387_v60 = vld [vmem:[%s1265_s9 + $0x30] sm:$0xff] }
  0x7a   : > { %v722_v59 = vpack.c.bf16 %v386_v58, %v385_v57  ;;  %v388_v61 = vld [vmem:[%s1265_s9 + $0x38] sm:$0xff]  ;;  %v389_v63 = vld [vmem:[%s1265_s9 + $0x40] sm:$0xff]  ;;  %v391_v2 = vld [vmem:[%s1265_s9 + $0x50] sm:$0xff] }
  0x7b   : > { %715 = vmatprep.subr.bf16.mxu1 %v714_v53  ;;  %v726_v62 = vpack.c.bf16 %v388_v61, %v387_v60  ;;  %v392_v3 = vld [vmem:[%s1265_s9 + $0x58] sm:$0xff]  ;;  %v393_v5 = vld [vmem:[%s1265_s9 + $0x60] sm:$0xff]  ;;  %v394_v6 = vld [vmem:[%s1265_s9 + $0x68] sm:$0xff] }
  0x7c   : > { %697 = vmatpush1.bf16.msra.mxu0 %v696_v26  ;;  %717 = vmatpush3.bf16.msra.mxu1 %v714_v53  ;;  %v734_v4 = vpack.c.bf16 %v392_v3, %v391_v2  ;;  %v738_v7 = vpack.c.bf16 %v394_v6, %v393_v5  ;;  %v395_v8 = vld [vmem:[%s1265_s9 + $0x70] sm:$0xff]  ;;  %v396_v9 = vld [vmem:[%s1265_s9 + $0x78] sm:$0xff] }
  0x7d   : > { %699 = vmatprep.subr.bf16.mxu0 %v698_v27  ;;  %719 = vmatprep.subr.bf16.mxu1 %v718_v56  ;;  %v742_v10 = vpack.c.bf16 %v396_v9, %v395_v8 }
  0x80   : > { %701 = vmatpush1.bf16.msra.mxu0 %v700_v32  ;;  %721 = vmatpush3.bf16.msra.mxu1 %v718_v56 }
  0x81   : > { %703 = vmatprep.subr.bf16.mxu0 %v702_v33  ;;  %723 = vmatprep.subr.bf16.mxu1 %v722_v59 }
  0x84   : > { %705 = vmatpush1.bf16.msra.mxu0 %v704_v38  ;;  %725 = vmatpush3.bf16.msra.mxu1 %v722_v59 }
  0x85   : > { %707 = vmatprep.subr.bf16.mxu0 %v706_v39  ;;  %727 = vmatprep.subr.bf16.mxu1 %v726_v62 }
  0x88   : > { %709 = vmatpush1.bf16.msra.mxu0 %v708_v44  ;;  %729 = vmatpush3.bf16.msra.mxu1 %v726_v62 }
  0x89   : > { %711 = vmatprep.subr.bf16.mxu0 %v710_v45 }
  0x8c   : > { %713 = vmatpush1.bf16.msra.mxu0 %v712_v48 }
  0x8f   : > { %355 = vmatmul.mubr.f32.vlgmr.msra.gmra.mrb[0].mxu0 %v256_v49 }
  0x90   : > { %360 = vmatprep.mubr.f32.mxu0 %v1020_v0  ;;  %v390_v0 = vld [vmem:[%s1265_s9 + $0x48] sm:$0xff] }
  0x91   : > { %v730_v1 = vpack.c.bf16 %v390_v0, %v389_v63 }
  0x93   : > { %361 = vmatmul.mubr.f32.gmra.mrb[2].mxu0 %v257_v50  ;;  %731 = vmatprep.subr.bf16.mxu1 %v730_v1 }
  0x94   : > { %733 = vmatpush3.bf16.msra.mxu1 %v730_v1 }
  0x95   : > { %735 = vmatprep.subr.bf16.mxu1 %v734_v4 }
  0x98   : > { %737 = vmatpush3.bf16.msra.mxu1 %v734_v4 }
  0x99   : > { %739 = vmatprep.subr.bf16.mxu1 %v738_v7 }
  0x9c   : > { %741 = vmatpush3.bf16.msra.mxu1 %v738_v7 }
  0x9d   : > { %743 = vmatprep.subr.bf16.mxu1 %v742_v10 }
  0xa0   : > { %745 = vmatpush3.bf16.msra.mxu1 %v742_v10 }
 0x162   : > { %v356_v11 = vpop.f32.mrb[0].mxu0 }
 0x163   : > { %v367_v12 = vsub.f32 0.0, %v356_v11  ;;  %v358_v13 = vpop.f32.mrb[1].mxu0 }
 0x165   : > { %v369_v14 = vmul.f32 1.442695, %v367_v12 }
 0x166   : > { %v362_v15 = vpop.f32.mrb[2].mxu0 }
 0x167   : > { %831 = vpow2.f32 %v369_v14  ;;  %v368_v16 = vsub.f32 0.0, %v362_v15  ;;  %v364_v17 = vpop.f32.mrb[3].mxu0 }
 0x169   : > { %v371_v18 = vmul.f32 1.442695, %v368_v16 }
 0x16b   : > { %833 = vpow2.f32 %v371_v18 }
 0x171   : > { %v832_v19 = vpop.eup %831 }
 0x172   : > { %v373_v20 = vadd.f32 1.0, %v832_v19 }
 0x174   : > { %835 = vrcp.f32 %v373_v20 }
 0x175   : > { %v834_v21 = vpop.eup %833 }
 0x176   : > { %v374_v22 = vadd.f32 1.0, %v834_v21 }
 0x178   : > { %837 = vrcp.f32 %v374_v22 }
 0x17e   : > { %v836_v23 = vpop.eup %835 }
 0x17f   : > { %v377_v24 = vmul.f32 %v836_v23, %v356_v11 }
 0x181   : > { %v379_v25 = vmul.f32 %v377_v24, %v358_v13 }
 0x182   : > { %v838_v26 = vpop.eup %837 }
 0x183   : > { %v378_v27 = vmul.f32 %v838_v26, %v362_v15  ;;  %679 = vmatprep.mubr.f32.mxu1 %v379_v25 }
 0x185   : > { %v380_v28 = vmul.f32 %v378_v27, %v364_v17 }
 0x187   : > { %680 = vmatmul.mubr.f32.vlgmr.msra.gmra.mrb[0].mxu1 %v380_v28 }
 0x255   : > { %475 = sbr.rel (%p621_p3) target bundleno = 605 (0x25d), region = 48 }
 0x25a   : > { %v681_v29 = vpop.f32.mrb[0].mxu1 }
 0x25b   : > { %v463_v30 = vpop.f32.mrb[1].mxu1  ;;  %477 = vst [vmem:[#allocation2 + $0x8] sm:$0xff] (!%p621_p3), %v681_v29 }
 0x25c   : > { %476 = vst [vmem:[#allocation2] sm:$0xff] %v463_v30 }
 0x25d PF: > { %p478_p11 = scmp.gt.s32.totalorder %s1003_s15, 0  ;;  %p479_p1 = scmp.lt.s32.totalorder %s1003_s15, 1 }
 0x25f   : > { %p480_p6 = pnand %p479_p1, %p478_p11 }
 0x261   : > { %483 = sbr.rel (%p480_p6) target bundleno = 616 (0x268), region = 52 }
 0x263   : > { %v484_v31 = vld [vmem:[#allocation2] sm:$0xff] (!%p480_p6)  ;;  %v485_v32 = vld [vmem:[#allocation2 + $0x8] sm:$0xff] (!%p480_p6) }
 0x264   : > { %v486_v33 = vadd.f32 (!%p480_p6), %v484_v31, %v463_v30  ;;  %v487_v34 = vadd.f32 (!%p480_p6), %v681_v29, %v485_v32 }
 0x266   : > { %488 = vst [vmem:[#allocation2] sm:$0xff] (!%p480_p6), %v486_v33  ;;  %489 = vst [vmem:[#allocation2 + $0x8] sm:$0xff] (!%p480_p6), %v487_v34 }
 0x268 PF: > { %p622_p4 = scmp.ne.s32.totalorder %s1003_s15, 1 }
 0x26a   : > { %493 = sbr.rel (%p622_p4) target bundleno = 625 (0x271), region = 56 }
 0x26d   : > { %v494_v35 = vld [vmem:[#allocation2] sm:$0xff] (!%p622_p4)  ;;  %v495_v36 = vld [vmem:[#allocation2 + $0x8] sm:$0xff] (!%p622_p4) }
 0x26e   : > { %v496_v37 = vadd.f32 (!%p622_p4), %v494_v35, %v463_v30  ;;  %v497_v38 = vadd.f32 (!%p622_p4), %v681_v29, %v495_v36 }
 0x270   : > { %498 = vst [vmem:[#allocation9] sm:$0xff] (!%p622_p4), %v496_v37  ;;  %499 = vst [vmem:[#allocation9 + $0x8] sm:$0xff] (!%p622_p4), %v497_v38 }
 0x271 PF: > { %p772_p7 = scmp.eq.s32.totalorder %s1133_s7, 1  ;;  %s1021_s4 = smov [#allocation9]  }
 0x272   : > { %s509_s11 = sshll.u32 %s1021_s4, 4  ;;  %s510_s11 = int_to_ptr.vmem [resolvable:$true] %s509_s11 }
 0x273   : > { %s927_s20 = scalar_lea.vmem %s510_s11, 256  ;;  %p934_p0 = scmp.lt.s32.totalorder %s510_s11, %s510_s11 }
 0x274   : > { %p928_p9 = scmp.ne.s32.totalorder %s510_s11, %s927_s20  ;;  %p935_p8 = scmp.lt.s32.totalorder %s927_s20, %s927_s20 }
 0x276   : > { %p929_p12 = pnand %p928_p9, %p772_p7  ;;  %p936_p2 = por %p935_p8, %p934_p0 }
 0x278   : > { %p930_p10 = pneg %p929_p12 }
 0x27a   : > { %p937_p13 = pnand %p936_p2, %p930_p10 }
 0x27c   : > { %940 = shalt.err (!%p937_p13)
}
 0x27d   : > { %s941_s23 = scalar_lea.hbm %s1331_s3, 256 }
 0x27e   : > { %p942_p5 = scmp.ne.s32.totalorder %s1331_s3, %s941_s23  ;;  %p947_p1 = scmp.lt.u32.totalorder %s941_s23, %s1331_s3 }
 0x280   : > { %p943_p3 = pnand %p942_p5, %p772_p7 }
 0x282   : > { %p944_p11 = pneg %p943_p3 }
 0x284   : > { %p949_p6 = pnand %p947_p1, %p944_p11 }
 0x286   : > { %952 = shalt.err (!%p949_p6)
}
 0x287   : > { %s1022_s29 = smov 128   ;;  %s1023_s6 = smov 8  }
 0x288   : > { %755 = dma.vmem_to_hbm [thread:$0]  (%p772_p7), %s510_s11, 256, %s1331_s3, [#allocation5], %s1022_s29, %s1022_s29, %s1023_s6  }
 0x289   : > { %986 = dma.done.wait (%p772_p7), [#allocation5], 256  }
 0x28a   : > { %988 = vsyncadd (%p772_p7), [#allocation5], 4294967040 }
 0x28b PF: > { %s18_s17 = sadd.s32 1, %s1011_s17   ;;  %s1343_s12 = smov %s995_s13 }
 0x28c   : > { %p15_p4 = scmp.ge.s32.totalorder %s18_s17, 4   ;;  %s1344_s13 = smov %s999_s14 }
 0x28d   : > { %s1345_s14 = smov %s1088_s24  ;;  %s1346_s15 = smov %s1007_s16 }
 0x28e   : > { %s1347_s16 = smov %s1349_s18  ;;  %17 = sbr.rel (!%p15_p4) target bundleno = 6 (0x6), region = 99 }
 0x295   :  { %525 = vsyncpa [#allocation4], 1 }
 0x296   :  { %527 = vsyncpa [#allocation4 + $0x1], 1 }
 0x297   :  { %528 = vsyncpa [#allocation7], 1 }
 0x298   :  { %530 = vsyncpa [#allocation7 + $0x1], 1 }
 0x299   :  { %531 = vsyncpa [#allocation5], 1 }
 0x29a   :  { %533 = vsyncpa [#allocation5 + $0x1], 1 }

</bundles_post_ra>
